<compile_context>
chip_gen: v7x
topology: tpu7x:2x2x1
jax: 0.10.0
libtpu: 0.0.40
codegen_flags: <defaults>
</compile_context>

<pallas_src>
import functools

import jax
import jax.numpy as jnp
from jax.experimental import pallas as pl
from jax.experimental.pallas import tpu as pltpu


def _round_up(x, m):
    return (x + m - 1) // m * m


def _real_conv_kernel(xr_ref, xi_ref, w_ref, b_ref, yr_ref, yi_ref, col_ref, *,
                      tap_offsets, Cin, Lout, Lp, bN):
    """One batch block: the shared conv applied to real and imaginary parts.

    xr_ref / xi_ref : (bN, Cin, Lin)       bf16, zero-padded, flattened input
    w_ref           : (Cout, Cin*KH*KW)    bf16, fused im2col weight (resident)
    b_ref           : (Cout, 1)            f32
    yr_ref / yi_ref : (bN, Cout, Lp)       f32, Lp = round_up(Ho*Wp, 128);
                                           junk columns are cropped host-side
    col_ref         : (Cin*KH*KW, 2*Lp)    bf16 VMEM scratch (im2col RHS,
                                           real stream in lanes [0,Lp),
                                           imag stream in lanes [Lp,2*Lp))
    """
    # Zero the scratch once so the (cropped) junk lanes are deterministic.
    @pl.when(pl.program_id(0) == 0)
    def _():
        col_ref[...] = jnp.zeros_like(col_ref)

    w = w_ref[...]          # (Cout, Cin*KH*KW) bf16 — resident across the grid
    bias = b_ref[...]       # (Cout, 1) f32

    for b in range(bN):     # small static unroll over the batch block
        # Build the im2col RHS for BOTH streams directly from the Refs with
        # static offsets (ref loads use the vld slots; no in-vreg lane rotates
        # of a fully-materialised input tile).
        for k, off in enumerate(tap_offsets):
            r0 = k * Cin
            col_ref[r0:r0 + Cin, 0:Lout] = xr_ref[b, :, off:off + Lout]
            col_ref[r0:r0 + Cin, Lp:Lp + Lout] = xi_ref[b, :, off:off + Lout]

        # One deep-contraction bf16 matmul (K = Cin*KH*KW) covering real+imag.
        y2 = jnp.dot(w, col_ref[...], preferred_element_type=jnp.float32) + bias

        # Lane-aligned splits (0 and Lp are multiples of 128) -> dense stores.
        yr_ref[b] = y2[:, :Lp]
        yi_ref[b] = y2[:, Lp:]


def real_conv_wrapper(xr, xi, weight, bias=None, *, padding=(0, 0),
                      stride=(1, 1), dilation=(1, 1), groups=1):
    """Forward of RealConvWrapper wrapping a stride-1 Conv2d.

    real = conv2d(xr, weight, bias);  imag = conv2d(xi, weight, bias)
    Default padding matches nn.Conv2d (0); pass the wrapped module's padding.
    """
    # TODO(synk): stride > 1, dilation and groups of the wrapped conv module
    # are not implemented (fail loudly instead of silently producing garbage).
    assert stride == (1, 1) and dilation == (1, 1) and groups == 1, (
        "real_conv_wrapper supports stride=1, dilation=1, groups=1 only")
    assert xr.shape == xi.shape
    N, Cin, H, W = xr.shape
    Cout, Cin_w, KH, KW = weight.shape
    assert Cin == Cin_w

    ph, pw = padding
    Hp, Wp = H + 2 * ph, W + 2 * pw
    Ho, Wo = Hp - KH + 1, Wp - KW + 1
    assert Ho > 0 and Wo > 0, "kernel larger than padded input"

    Lout = Ho * Wp                       # flat output length (junk cols at Wo..Wp-1)
    Lp = _round_up(Lout, 128)            # lane-dense output width
    Ck = Cin * KH * KW                   # fused contraction depth

    # Single pad pass per stream: spatial zero-padding plus one extra bottom
    # row, which supplies the >= KW-1 trailing lanes every tap window needs
    # (Wp >= KW > KW-1), then a free contiguous reshape to lane-major flat.
    extra_rows = 1 if KW > 1 else 0
    Lin = (Hp + extra_rows) * Wp

    def prep(x):
        xp = jnp.pad(x.astype(jnp.bfloat16),
                     ((0, 0), (0, 0), (ph, ph + extra_rows), (pw, pw)))
        return xp.reshape(N, Cin, Lin)

    xr_f, xi_f = prep(xr), prep(xi)

    # Fused im2col weight: (Cout, Cin, KH, KW) -> (Cout, KH, KW, Cin)
    # -> (Cout, KH*KW*Cin); column order matches the im2col row order
    # (tap-major, channel-minor).  bf16 for the MXU, f32 accumulation.
    w2 = jnp.transpose(weight.astype(jnp.bfloat16), (0, 2, 3, 1)).reshape(Cout, Ck)
    if bias is None:
        bias = jnp.zeros((Cout,), jnp.float32)
    b2 = bias.astype(jnp.float32).reshape(Cout, 1)

    # Static lane offset of each conv tap in the flat padded input.
    tap_offsets = tuple(kh * Wp + kw for kh in range(KH) for kw in range(KW))

    # --- batch block size: fill VMEM budget, but keep >= 2 grid steps when
    # N >= 2 so both v7x TensorCores get work; bN must divide N. -------------
    per_elem_bytes = 2 * Cin * Lin * 2 + 2 * Cout * Lp * 4
    cap = max(1, (4 << 20) // max(per_elem_bytes, 1))
    if N >= 2:
        cap = min(cap, max(1, N // 2))
    bN = 1
    for d in range(1, min(cap, N) + 1):
        if N % d == 0:
            bN = d
    grid = (N // bN,)

    # --- VMEM limit derived from the actual block / scratch sizes -----------
    in_bytes = 2 * 2 * bN * _round_up(Cin, 8) * _round_up(Lin, 128) * 2
    out_bytes = 2 * 2 * bN * _round_up(Cout, 8) * Lp * 4
    col_bytes = _round_up(Ck, 8) * (2 * Lp) * 2
    w_bytes = _round_up(Cout, 8) * _round_up(Ck, 128) * 2 + _round_up(Cout, 8) * 128 * 4
    vmem_limit = int(min(64 << 20, max(8 << 20,
                                       2 * (in_bytes + out_bytes + col_bytes + w_bytes))))

    kernel = functools.partial(_real_conv_kernel, tap_offsets=tap_offsets,
                               Cin=Cin, Lout=Lout, Lp=Lp, bN=bN)

    yr_f, yi_f = pl.pallas_call(
        kernel,
        grid=grid,
        out_shape=(jax.ShapeDtypeStruct((N, Cout, Lp), jnp.float32),
                   jax.ShapeDtypeStruct((N, Cout, Lp), jnp.float32)),
        in_specs=[
            pl.BlockSpec((bN, Cin, Lin), lambda n: (n, 0, 0)),
            pl.BlockSpec((bN, Cin, Lin), lambda n: (n, 0, 0)),
            pl.BlockSpec((Cout, Ck), lambda n: (0, 0)),      # resident weight
            pl.BlockSpec((Cout, 1), lambda n: (0, 0)),       # resident bias
        ],
        out_specs=(
            pl.BlockSpec((bN, Cout, Lp), lambda n: (n, 0, 0)),
            pl.BlockSpec((bN, Cout, Lp), lambda n: (n, 0, 0)),
        ),
        scratch_shapes=[pltpu.VMEM((Ck, 2 * Lp), jnp.bfloat16)],
        compiler_params=pltpu.CompilerParams(
            dimension_semantics=("parallel",),
            vmem_limit_bytes=vmem_limit,
        ),
    )(xr_f, xi_f, w2, b2)

    def crop(y):  # (N, Cout, Lp) -> (N, Cout, Ho, Wo): drop junk lanes/columns
        return y[:, :, :Lout].reshape(N, Cout, Ho, Wp)[:, :, :, :Wo]

    return crop(yr_f), crop(yi_f)


def _reference(xr, xi, weight, bias, padding):
    """Pure-JAX reference mirroring RealConvWrapper.forward with nn.Conv2d."""
    dn = jax.lax.conv_dimension_numbers(xr.shape, weight.shape,
                                        ("NCHW", "OIHW", "NCHW"))

    def conv(x):
        y = jax.lax.conv_general_dilated(
            x.astype(jnp.float32), weight.astype(jnp.float32),
            window_strides=(1, 1),
            padding=[(padding[0], padding[0]), (padding[1], padding[1])],
            dimension_numbers=dn)
        return y + bias.reshape(1, -1, 1, 1)

    return conv(xr), conv(xi)


if __name__ == "__main__":
    key = jax.random.PRNGKey(0)
    k_xr, k_xi, k_w, k_b = jax.random.split(key, 4)

    N, Cin, Cout, H, W, K = 2, 4, 4, 16, 16, 3
    xr = jax.random.normal(k_xr, (N, Cin, H, W), dtype=jnp.float32)
    xi = jax.random.normal(k_xi, (N, Cin, H, W), dtype=jnp.float32)
    # TODO(synk): complex_rayleigh_init is host-side parameter init; plain
    # random weights are used for the forward-pass demo.
    weight = 0.1 * jax.random.normal(k_w, (Cout, Cin, K, K), dtype=jnp.float32)
    bias = 0.1 * jax.random.normal(k_b, (Cout,), dtype=jnp.float32)

    yr, yi = real_conv_wrapper(xr, xi, weight, bias, padding=(1, 1))
    jax.block_until_ready((yr, yi))

    yr_ref, yi_ref = _reference(xr, xi, weight, bias, (1, 1))
    assert yr.shape == yr_ref.shape == (N, Cout, H, W)
    assert yi.shape == yi_ref.shape == (N, Cout, H, W)
    # bf16 matmul inputs with f32 accumulation -> slightly looser tolerance.
    assert jnp.allclose(yr, yr_ref, atol=2e-2, rtol=2e-2)
    assert jnp.allclose(yi, yi_ref, atol=2e-2, rtol=2e-2)

    print("KERNEL_OK")
</pallas_src>

<mosaic_0001>
module attributes {stable_mosaic.version = 11 : i64} {
  func.func @_real_conv_kernel(%arg0: i32, %arg1: memref<1x4x342xbf16, #tpu.memory_space<vmem>>, %arg2: memref<1x4x342xbf16, #tpu.memory_space<vmem>>, %arg3: memref<4x36xbf16, #tpu.memory_space<vmem>>, %arg4: memref<4x1xf32, #tpu.memory_space<vmem>>, %arg5: memref<1x4x384xf32, #tpu.memory_space<vmem>>, %arg6: memref<1x4x384xf32, #tpu.memory_space<vmem>>, %arg7: memref<36x768xbf16, #tpu.memory_space<vmem>>) attributes {dimension_semantics = [#tpu.dimension_semantics<parallel>], iteration_bounds = array<i64: 2>, scalar_prefetch = 0 : i64, scratch_operands = 1 : i64, tpu.core_type = #tpu.core_type<tc>, window_params = [{transform_indices = @transform_0, window_bounds = array<i64: 1, 4, 342>}, {transform_indices = @transform_1, window_bounds = array<i64: 1, 4, 342>}, {pipeline_mode = #tpu.pipeline_mode<synchronous>, transform_indices = @transform_2, window_bounds = array<i64: 4, 36>}, {pipeline_mode = #tpu.pipeline_mode<synchronous>, transform_indices = @transform_3, window_bounds = array<i64: 4, 1>}, {transform_indices = @transform_4, window_bounds = array<i64: 1, 4, 384>}, {transform_indices = @transform_5, window_bounds = array<i64: 1, 4, 384>}]} {
    %c0_i32 = arith.constant 0 : i32
    %0 = arith.cmpi eq, %arg0, %c0_i32 : i32
    %1 = arith.extui %0 : i1 to i32
    %c0_i32_0 = arith.constant 0 : i32
    %2 = arith.cmpi ne, %1, %c0_i32_0 : i32
    scf.if %2 {
      %cst_86 = arith.constant 0.000000e+00 : bf16
      %71 = vector.broadcast %cst_86 : bf16 to vector<36x768xbf16>
      %c0_87 = arith.constant 0 : index
      %c0_88 = arith.constant 0 : index
      %72 = vector.load %arg7[%c0_87, %c0_88] : memref<36x768xbf16, #tpu.memory_space<vmem>>, vector<36x768xbf16>
      tpu.vector_store %arg7[%c0_87, %c0_88], %71 {strides = array<i32>} : memref<36x768xbf16, #tpu.memory_space<vmem>>, vector<36x768xbf16>,
    } else {
    }
    %c0 = arith.constant 0 : index
    %c0_1 = arith.constant 0 : index
    %3 = vector.load %arg3[%c0, %c0_1] : memref<4x36xbf16, #tpu.memory_space<vmem>>, vector<4x36xbf16>
    %c0_2 = arith.constant 0 : index
    %c0_3 = arith.constant 0 : index
    %4 = vector.load %arg4[%c0_2, %c0_3] : memref<4x1xf32, #tpu.memory_space<vmem>>, vector<4x1xf32>
    %c0_4 = arith.constant 0 : index
    %c0_5 = arith.constant 0 : index
    %c0_6 = arith.constant 0 : index
    %5 = vector.load %arg1[%c0_4, %c0_5, %c0_6] : memref<1x4x342xbf16, #tpu.memory_space<vmem>>, vector<1x4x288xbf16>
    %6 = vector.shape_cast %5 : vector<1x4x288xbf16> to vector<4x288xbf16>
    %c0_7 = arith.constant 0 : index
    %c0_8 = arith.constant 0 : index
    %7 = vector.load %arg7[%c0_7, %c0_8] : memref<36x768xbf16, #tpu.memory_space<vmem>>, vector<4x288xbf16>
    tpu.vector_store %arg7[%c0_7, %c0_8], %6 {strides = array<i32>} : memref<36x768xbf16, #tpu.memory_space<vmem>>, vector<4x288xbf16>,
    %c0_9 = arith.constant 0 : index
    %c0_10 = arith.constant 0 : index
    %c0_11 = arith.constant 0 : index
    %8 = vector.load %arg2[%c0_9, %c0_10, %c0_11] : memref<1x4x342xbf16, #tpu.memory_space<vmem>>, vector<1x4x288xbf16>
    %9 = vector.shape_cast %8 : vector<1x4x288xbf16> to vector<4x288xbf16>
    %c0_12 = arith.constant 0 : index
    %c384 = arith.constant 384 : index
    %10 = vector.load %arg7[%c0_12, %c384] : memref<36x768xbf16, #tpu.memory_space<vmem>>, vector<4x288xbf16>
    tpu.vector_store %arg7[%c0_12, %c384], %9 {strides = array<i32>} : memref<36x768xbf16, #tpu.memory_space<vmem>>, vector<4x288xbf16>,
    %c0_13 = arith.constant 0 : index
    %c0_14 = arith.constant 0 : index
    %c1 = arith.constant 1 : index
    %11 = vector.load %arg1[%c0_13, %c0_14, %c1] : memref<1x4x342xbf16, #tpu.memory_space<vmem>>, vector<1x4x288xbf16>
    %12 = vector.shape_cast %11 : vector<1x4x288xbf16> to vector<4x288xbf16>
    %c4 = arith.constant 4 : index
    %c0_15 = arith.constant 0 : index
    %13 = vector.load %arg7[%c4, %c0_15] : memref<36x768xbf16, #tpu.memory_space<vmem>>, vector<4x288xbf16>
    tpu.vector_store %arg7[%c4, %c0_15], %12 {strides = array<i32>} : memref<36x768xbf16, #tpu.memory_space<vmem>>, vector<4x288xbf16>,
    %c0_16 = arith.constant 0 : index
    %c0_17 = arith.constant 0 : index
    %c1_18 = arith.constant 1 : index
    %14 = vector.load %arg2[%c0_16, %c0_17, %c1_18] : memref<1x4x342xbf16, #tpu.memory_space<vmem>>, vector<1x4x288xbf16>
    %15 = vector.shape_cast %14 : vector<1x4x288xbf16> to vector<4x288xbf16>
    %c4_19 = arith.constant 4 : index
    %c384_20 = arith.constant 384 : index
    %16 = vector.load %arg7[%c4_19, %c384_20] : memref<36x768xbf16, #tpu.memory_space<vmem>>, vector<4x288xbf16>
    tpu.vector_store %arg7[%c4_19, %c384_20], %15 {strides = array<i32>} : memref<36x768xbf16, #tpu.memory_space<vmem>>, vector<4x288xbf16>,
    %c0_21 = arith.constant 0 : index
    %c0_22 = arith.constant 0 : index
    %c2 = arith.constant 2 : index
    %17 = vector.load %arg1[%c0_21, %c0_22, %c2] : memref<1x4x342xbf16, #tpu.memory_space<vmem>>, vector<1x4x288xbf16>
    %18 = vector.shape_cast %17 : vector<1x4x288xbf16> to vector<4x288xbf16>
    %c8 = arith.constant 8 : index
    %c0_23 = arith.constant 0 : index
    %19 = vector.load %arg7[%c8, %c0_23] : memref<36x768xbf16, #tpu.memory_space<vmem>>, vector<4x288xbf16>
    tpu.vector_store %arg7[%c8, %c0_23], %18 {strides = array<i32>} : memref<36x768xbf16, #tpu.memory_space<vmem>>, vector<4x288xbf16>,
    %c0_24 = arith.constant 0 : index
    %c0_25 = arith.constant 0 : index
    %c2_26 = arith.constant 2 : index
    %20 = vector.load %arg2[%c0_24, %c0_25, %c2_26] : memref<1x4x342xbf16, #tpu.memory_space<vmem>>, vector<1x4x288xbf16>
    %21 = vector.shape_cast %20 : vector<1x4x288xbf16> to vector<4x288xbf16>
    %c8_27 = arith.constant 8 : index
    %c384_28 = arith.constant 384 : index
    %22 = vector.load %arg7[%c8_27, %c384_28] : memref<36x768xbf16, #tpu.memory_space<vmem>>, vector<4x288xbf16>
    tpu.vector_store %arg7[%c8_27, %c384_28], %21 {strides = array<i32>} : memref<36x768xbf16, #tpu.memory_space<vmem>>, vector<4x288xbf16>,
    %c0_29 = arith.constant 0 : index
    %c0_30 = arith.constant 0 : index
    %c18 = arith.constant 18 : index
    %23 = vector.load %arg1[%c0_29, %c0_30, %c18] : memref<1x4x342xbf16, #tpu.memory_space<vmem>>, vector<1x4x288xbf16>
    %24 = vector.shape_cast %23 : vector<1x4x288xbf16> to vector<4x288xbf16>
    %c12 = arith.constant 12 : index
    %c0_31 = arith.constant 0 : index
    %25 = vector.load %arg7[%c12, %c0_31] : memref<36x768xbf16, #tpu.memory_space<vmem>>, vector<4x288xbf16>
    tpu.vector_store %arg7[%c12, %c0_31], %24 {strides = array<i32>} : memref<36x768xbf16, #tpu.memory_space<vmem>>, vector<4x288xbf16>,
    %c0_32 = arith.constant 0 : index
    %c0_33 = arith.constant 0 : index
    %c18_34 = arith.constant 18 : index
    %26 = vector.load %arg2[%c0_32, %c0_33, %c18_34] : memref<1x4x342xbf16, #tpu.memory_space<vmem>>, vector<1x4x288xbf16>
    %27 = vector.shape_cast %26 : vector<1x4x288xbf16> to vector<4x288xbf16>
    %c12_35 = arith.constant 12 : index
    %c384_36 = arith.constant 384 : index
    %28 = vector.load %arg7[%c12_35, %c384_36] : memref<36x768xbf16, #tpu.memory_space<vmem>>, vector<4x288xbf16>
    tpu.vector_store %arg7[%c12_35, %c384_36], %27 {strides = array<i32>} : memref<36x768xbf16, #tpu.memory_space<vmem>>, vector<4x288xbf16>,
    %c0_37 = arith.constant 0 : index
    %c0_38 = arith.constant 0 : index
    %c19 = arith.constant 19 : index
    %29 = vector.load %arg1[%c0_37, %c0_38, %c19] : memref<1x4x342xbf16, #tpu.memory_space<vmem>>, vector<1x4x288xbf16>
    %30 = vector.shape_cast %29 : vector<1x4x288xbf16> to vector<4x288xbf16>
    %c16 = arith.constant 16 : index
    %c0_39 = arith.constant 0 : index
    %31 = vector.load %arg7[%c16, %c0_39] : memref<36x768xbf16, #tpu.memory_space<vmem>>, vector<4x288xbf16>
    tpu.vector_store %arg7[%c16, %c0_39], %30 {strides = array<i32>} : memref<36x768xbf16, #tpu.memory_space<vmem>>, vector<4x288xbf16>,
    %c0_40 = arith.constant 0 : index
    %c0_41 = arith.constant 0 : index
    %c19_42 = arith.constant 19 : index
    %32 = vector.load %arg2[%c0_40, %c0_41, %c19_42] : memref<1x4x342xbf16, #tpu.memory_space<vmem>>, vector<1x4x288xbf16>
    %33 = vector.shape_cast %32 : vector<1x4x288xbf16> to vector<4x288xbf16>
    %c16_43 = arith.constant 16 : index
    %c384_44 = arith.constant 384 : index
    %34 = vector.load %arg7[%c16_43, %c384_44] : memref<36x768xbf16, #tpu.memory_space<vmem>>, vector<4x288xbf16>
    tpu.vector_store %arg7[%c16_43, %c384_44], %33 {strides = array<i32>} : memref<36x768xbf16, #tpu.memory_space<vmem>>, vector<4x288xbf16>,
    %c0_45 = arith.constant 0 : index
    %c0_46 = arith.constant 0 : index
    %c20 = arith.constant 20 : index
    %35 = vector.load %arg1[%c0_45, %c0_46, %c20] : memref<1x4x342xbf16, #tpu.memory_space<vmem>>, vector<1x4x288xbf16>
    %36 = vector.shape_cast %35 : vector<1x4x288xbf16> to vector<4x288xbf16>
    %c20_47 = arith.constant 20 : index
    %c0_48 = arith.constant 0 : index
    %37 = vector.load %arg7[%c20_47, %c0_48] : memref<36x768xbf16, #tpu.memory_space<vmem>>, vector<4x288xbf16>
    tpu.vector_store %arg7[%c20_47, %c0_48], %36 {strides = array<i32>} : memref<36x768xbf16, #tpu.memory_space<vmem>>, vector<4x288xbf16>,
    %c0_49 = arith.constant 0 : index
    %c0_50 = arith.constant 0 : index
    %c20_51 = arith.constant 20 : index
    %38 = vector.load %arg2[%c0_49, %c0_50, %c20_51] : memref<1x4x342xbf16, #tpu.memory_space<vmem>>, vector<1x4x288xbf16>
    %39 = vector.shape_cast %38 : vector<1x4x288xbf16> to vector<4x288xbf16>
    %c20_52 = arith.constant 20 : index
    %c384_53 = arith.constant 384 : index
    %40 = vector.load %arg7[%c20_52, %c384_53] : memref<36x768xbf16, #tpu.memory_space<vmem>>, vector<4x288xbf16>
    tpu.vector_store %arg7[%c20_52, %c384_53], %39 {strides = array<i32>} : memref<36x768xbf16, #tpu.memory_space<vmem>>, vector<4x288xbf16>,
    %c0_54 = arith.constant 0 : index
    %c0_55 = arith.constant 0 : index
    %c36 = arith.constant 36 : index
    %41 = vector.load %arg1[%c0_54, %c0_55, %c36] : memref<1x4x342xbf16, #tpu.memory_space<vmem>>, vector<1x4x288xbf16>
    %42 = vector.shape_cast %41 : vector<1x4x288xbf16> to vector<4x288xbf16>
    %c24 = arith.constant 24 : index
    %c0_56 = arith.constant 0 : index
    %43 = vector.load %arg7[%c24, %c0_56] : memref<36x768xbf16, #tpu.memory_space<vmem>>, vector<4x288xbf16>
    tpu.vector_store %arg7[%c24, %c0_56], %42 {strides = array<i32>} : memref<36x768xbf16, #tpu.memory_space<vmem>>, vector<4x288xbf16>,
    %c0_57 = arith.constant 0 : index
    %c0_58 = arith.constant 0 : index
    %c36_59 = arith.constant 36 : index
    %44 = vector.load %arg2[%c0_57, %c0_58, %c36_59] : memref<1x4x342xbf16, #tpu.memory_space<vmem>>, vector<1x4x288xbf16>
    %45 = vector.shape_cast %44 : vector<1x4x288xbf16> to vector<4x288xbf16>
    %c24_60 = arith.constant 24 : index
    %c384_61 = arith.constant 384 : index
    %46 = vector.load %arg7[%c24_60, %c384_61] : memref<36x768xbf16, #tpu.memory_space<vmem>>, vector<4x288xbf16>
    tpu.vector_store %arg7[%c24_60, %c384_61], %45 {strides = array<i32>} : memref<36x768xbf16, #tpu.memory_space<vmem>>, vector<4x288xbf16>,
    %c0_62 = arith.constant 0 : index
    %c0_63 = arith.constant 0 : index
    %c37 = arith.constant 37 : index
    %47 = vector.load %arg1[%c0_62, %c0_63, %c37] : memref<1x4x342xbf16, #tpu.memory_space<vmem>>, vector<1x4x288xbf16>
    %48 = vector.shape_cast %47 : vector<1x4x288xbf16> to vector<4x288xbf16>
    %c28 = arith.constant 28 : index
    %c0_64 = arith.constant 0 : index
    %49 = vector.load %arg7[%c28, %c0_64] : memref<36x768xbf16, #tpu.memory_space<vmem>>, vector<4x288xbf16>
    tpu.vector_store %arg7[%c28, %c0_64], %48 {strides = array<i32>} : memref<36x768xbf16, #tpu.memory_space<vmem>>, vector<4x288xbf16>,
    %c0_65 = arith.constant 0 : index
    %c0_66 = arith.constant 0 : index
    %c37_67 = arith.constant 37 : index
    %50 = vector.load %arg2[%c0_65, %c0_66, %c37_67] : memref<1x4x342xbf16, #tpu.memory_space<vmem>>, vector<1x4x288xbf16>
    %51 = vector.shape_cast %50 : vector<1x4x288xbf16> to vector<4x288xbf16>
    %c28_68 = arith.constant 28 : index
    %c384_69 = arith.constant 384 : index
    %52 = vector.load %arg7[%c28_68, %c384_69] : memref<36x768xbf16, #tpu.memory_space<vmem>>, vector<4x288xbf16>
    tpu.vector_store %arg7[%c28_68, %c384_69], %51 {strides = array<i32>} : memref<36x768xbf16, #tpu.memory_space<vmem>>, vector<4x288xbf16>,
    %c0_70 = arith.constant 0 : index
    %c0_71 = arith.constant 0 : index
    %c38 = arith.constant 38 : index
    %53 = vector.load %arg1[%c0_70, %c0_71, %c38] : memref<1x4x342xbf16, #tpu.memory_space<vmem>>, vector<1x4x288xbf16>
    %54 = vector.shape_cast %53 : vector<1x4x288xbf16> to vector<4x288xbf16>
    %c32 = arith.constant 32 : index
    %c0_72 = arith.constant 0 : index
    %55 = vector.load %arg7[%c32, %c0_72] : memref<36x768xbf16, #tpu.memory_space<vmem>>, vector<4x288xbf16>
    tpu.vector_store %arg7[%c32, %c0_72], %54 {strides = array<i32>} : memref<36x768xbf16, #tpu.memory_space<vmem>>, vector<4x288xbf16>,
    %c0_73 = arith.constant 0 : index
    %c0_74 = arith.constant 0 : index
    %c38_75 = arith.constant 38 : index
    %56 = vector.load %arg2[%c0_73, %c0_74, %c38_75] : memref<1x4x342xbf16, #tpu.memory_space<vmem>>, vector<1x4x288xbf16>
    %57 = vector.shape_cast %56 : vector<1x4x288xbf16> to vector<4x288xbf16>
    %c32_76 = arith.constant 32 : index
    %c384_77 = arith.constant 384 : index
    %58 = vector.load %arg7[%c32_76, %c384_77] : memref<36x768xbf16, #tpu.memory_space<vmem>>, vector<4x288xbf16>
    tpu.vector_store %arg7[%c32_76, %c384_77], %57 {strides = array<i32>} : memref<36x768xbf16, #tpu.memory_space<vmem>>, vector<4x288xbf16>,
    %c0_78 = arith.constant 0 : index
    %c0_79 = arith.constant 0 : index
    %59 = vector.load %arg7[%c0_78, %c0_79] : memref<36x768xbf16, #tpu.memory_space<vmem>>, vector<36x768xbf16>
    %cst = arith.constant dense<0.000000e+00> : vector<4x768xf32>
    %60 = tpu.matmul %3, %59, %cst {dimension_numbers = #tpu.dot_dimension_numbers<[1], [0], [0], [1], [0, 0, 1, 1], [], []>} : vector<4x36xbf16>, vector<36x768xbf16>, vector<4x768xf32> -> vector<4x768xf32>
    %61 = vector.broadcast %4 : vector<4x1xf32> to vector<4x768xf32>
    %62 = arith.addf %60, %61 : vector<4x768xf32>
    %63 = vector.extract_strided_slice %62 {offsets = [0, 0], sizes = [4, 384], strides = [1, 1]} : vector<4x768xf32> to vector<4x384xf32>
    %c0_80 = arith.constant 0 : index
    %c0_81 = arith.constant 0 : index
    %c0_82 = arith.constant 0 : index
    %64 = vector.load %arg5[%c0_80, %c0_81, %c0_82] : memref<1x4x384xf32, #tpu.memory_space<vmem>>, vector<1x4x384xf32>
    %65 = vector.shape_cast %64 : vector<1x4x384xf32> to vector<4x384xf32>
    %66 = vector.shape_cast %63 : vector<4x384xf32> to vector<1x4x384xf32>
    tpu.vector_store %arg5[%c0_80, %c0_81, %c0_82], %66 {strides = array<i32>} : memref<1x4x384xf32, #tpu.memory_space<vmem>>, vector<1x4x384xf32>,
    %67 = vector.extract_strided_slice %62 {offsets = [0, 384], sizes = [4, 384], strides = [1, 1]} : vector<4x768xf32> to vector<4x384xf32>
    %c0_83 = arith.constant 0 : index
    %c0_84 = arith.constant 0 : index
    %c0_85 = arith.constant 0 : index
    %68 = vector.load %arg6[%c0_83, %c0_84, %c0_85] : memref<1x4x384xf32, #tpu.memory_space<vmem>>, vector<1x4x384xf32>
    %69 = vector.shape_cast %68 : vector<1x4x384xf32> to vector<4x384xf32>
    %70 = vector.shape_cast %67 : vector<4x384xf32> to vector<1x4x384xf32>
    tpu.vector_store %arg6[%c0_83, %c0_84, %c0_85], %70 {strides = array<i32>} : memref<1x4x384xf32, #tpu.memory_space<vmem>>, vector<1x4x384xf32>,
    return
  }
  func.func @transform_0(%arg0: i32) -> (i32, i32, i32) {
    %c0_i32 = arith.constant 0 : i32
    %c0_i32_0 = arith.constant 0 : i32
    %c0_i32_1 = arith.constant 0 : i32
    return %arg0, %c0_i32, %c0_i32_0 : i32, i32, i32
  }
  func.func @transform_1(%arg0: i32) -> (i32, i32, i32) {
    %c0_i32 = arith.constant 0 : i32
    %c0_i32_0 = arith.constant 0 : i32
    %c0_i32_1 = arith.constant 0 : i32
    return %arg0, %c0_i32, %c0_i32_0 : i32, i32, i32
  }
  func.func @transform_2(%arg0: i32) -> (i32, i32) {
    %c0_i32 = arith.constant 0 : i32
    %c0_i32_0 = arith.constant 0 : i32
    %c0_i32_1 = arith.constant 0 : i32
    return %c0_i32, %c0_i32_0 : i32, i32
  }
  func.func @transform_3(%arg0: i32) -> (i32, i32) {
    %c0_i32 = arith.constant 0 : i32
    %c0_i32_0 = arith.constant 0 : i32
    %c0_i32_1 = arith.constant 0 : i32
    return %c0_i32, %c0_i32_0 : i32, i32
  }
  func.func @transform_4(%arg0: i32) -> (i32, i32, i32) {
    %c0_i32 = arith.constant 0 : i32
    %c0_i32_0 = arith.constant 0 : i32
    %c0_i32_1 = arith.constant 0 : i32
    return %arg0, %c0_i32, %c0_i32_0 : i32, i32, i32
  }
  func.func @transform_5(%arg0: i32) -> (i32, i32, i32) {
    %c0_i32 = arith.constant 0 : i32
    %c0_i32_0 = arith.constant 0 : i32
    %c0_i32_1 = arith.constant 0 : i32
    return %arg0, %c0_i32, %c0_i32_0 : i32, i32, i32
  }
}

</mosaic_0001>

<bundles_post_ra>
// kernel: tpu_custom_call.1
= control target key start
LH: loop header
LB: loop body
LE: loop exit
PB: predicated region body
PF: predicated region fallthrough
CT: control target
= control target key end

     0   :  { %11 = vsyncpa [#allocation4], 0  ;;  %s2009_s0 = inlined_call_operand.hbm [shape: bf16[2,4,342], index: 0, kind: input, shape index: {}]   ;;  %s2010_s1 = inlined_call_operand.hbm [shape: bf16[2,4,342], index: 1, kind: input, shape index: {}]   ;;  %s2011_s2 = inlined_call_operand.vmem [shape: bf16[4,36], index: 2, kind: input, shape index: {}]   ;;  %s2012_s3 = inlined_call_operand.vmem [shape: f32[4,1], index: 3, kind: input, shape index: {}]   ;;  %s2013_s4 = inlined_call_operand.hbm [shape: f32[2,4,384], index: 4, kind: output, shape index: {0}]   ;;  %s2014_s5 = inlined_call_operand.hbm [shape: f32[2,4,384], index: 5, kind: output, shape index: {1}]  }
   0x1   :  { %13 = vsyncpa [#allocation4 + $0x1], 0 }
   0x2   :  { %14 = vsyncpa [#allocation7], 0 }
   0x3   :  { %16 = vsyncpa [#allocation7 + $0x1], 0 }
   0x4   :  { %17 = vsyncpa [#allocation5], 0 }
   0x5   :  { %19 = vsyncpa [#allocation5 + $0x1], 0 }
   0x6   :  { %20 = vsyncpa [#allocation10], 0 }
   0x7   :  { %22 = vsyncpa [#allocation10 + $0x1], 0  ;;  %s1601_s18 = smov 0   ;;  %s1603_s19 = smov 0  }
   0x8   :  { %s1605_s20 = smov 0   ;;  %s1607_s21 = smov 0  }
   0x9 LB: > { %s1622_s22 = sadd.s32 4294967295, %s1554_s21   ;;  %s1241_s23 = sadd.s32 4294967294, %s1554_s21   ;;  %s1554_s21 = sphi %s1607_s21, %s2032_s21   ;;  %s1550_s20 = sphi %s1605_s20, %s2031_s20   ;;  %s1546_s19 = sphi %s1603_s19, %s2030_s19   ;;  %s1542_s18 = sphi %s1601_s18, %s2029_s18  }
   0xa   : > { %s1626_s24 = sadd.s32 1, %s1554_s21   ;;  %s35_s25 = sadd.s32 1, %s1550_s20 }
   0xb   : > { %s32_s26 = ssub.s32 %s1554_s21, %s1626_s24  ;;  %p42_p0 = scmp.ne.s32.totalorder %s1550_s20, %s1546_s19 }
   0xc   : > { %p33_p1 = scmp.eq.s32.totalorder %s32_s26, 0  ;;  %p43_p2 = scmp.eq.s32.totalorder %s1554_s21, 0 }
   0xd   : > { %p48_p3 = scmp.ne.s32.totalorder %s1546_s19, %s1542_s18  ;;  %p49_p4 = scmp.eq.s32.totalorder %s1622_s22, 0 }
   0xe   : > { %s1638_s27 = scalar_select %p33_p1, %s1550_s20, %s35_s25  }
   0xf   : > { %p44_p5 = por %p43_p2, %p42_p0  ;;  %p1640_p6 = por %p49_p4, %p48_p3 }
  0x10   : > { %p140_p7 = scmp.eq.s32.totalorder %s1622_s22, 1  ;;  %p146_p8 = scmp.eq.s32.totalorder %s1241_s23, 1 }
  0x11   : > { %s2017_s28 = scalar_select %p1640_p6, 1, 0 }
  0x12   : > { %p1308_p10 = scmp.lt.s32.totalorder %s1554_s21, 2  ;;  %p1647_p11 = por %p140_p7, %p42_p0 }
  0x13   : > { %p1651_p12 = por %p146_p8, %p48_p3  ;;  %s1656_s6 = sand.u32 1, %s1550_s20  }
  0x14   : > { %s2018_s29 = scalar_select %p1647_p11, 1, 0 }
  0x15   : > { %s2019_s30 = scalar_select %p1651_p12, 1, 0 }
  0x16   : > { %s1279_s7 = smul.u32 96, %s1554_s21  ;;  %p1667_p13 = pnand %p1308_p10, %p44_p5 }
  0x17   : > { %s1278_s8 = smul.u32 6, %s1656_s6  ;;  %s199_s15 = scalar_lea.sflag [#allocation4], %s1656_s6 }
  0x18   : > { %s1665_s11 = scalar_lea.hbm %s2009_s0, %s1279_s7  ;;  %p1394_p3 = pneg %p1667_p13 }
  0x19   : > { %s202_s13 = scalar_lea.vmem [#allocation3], %s1278_s8  ;;  %s1392_s16 = scalar_lea.hbm %s1665_s11, 96 }
  0x1a   : > { %s210_s14 = sshll.u32 %s202_s13, 4  ;;  %p1393_p2 = scmp.ne.s32.totalorder %s1665_s11, %s1392_s16  ;;  %s1674_s14 = int_to_ptr.vmem [resolvable:$true] %s210_s14 }
  0x1b   : > { %s1397_s25 = scalar_lea.hbm %s2009_s0, 192  ;;  %p1398_p7 = scmp.lt.u32.totalorder %s1665_s11, %s2009_s0 }
  0x1c   : > { %p1395_p4 = pnand %p1394_p3, %p1393_p2  ;;  %p1399_p8 = scmp.lt.u32.totalorder %s1397_s25, %s1392_s16 }
  0x1d   : > { %p1401_p9 = scmp.lt.u32.totalorder %s1392_s16, %s1665_s11 }
  0x1e   : > { %p1396_p5 = pneg %p1395_p4  ;;  %p1400_p10 = por %p1399_p8, %p1398_p7 }
  0x20   : > { %p1402_p0 = por %p1401_p9, %p1400_p10 }
  0x22   : > { %p1403_p1 = pnand %p1402_p0, %p1396_p5 }
  0x24   : > { %1406 = shalt.err (!%p1403_p1)
}
  0x25   : > { %s1407_s10 = scalar_lea.vmem %s1674_s14, 96  ;;  %s1556_s13 = smov [#allocation3]  }
  0x26   : > { %p1408_p2 = scmp.ne.s32.totalorder %s1674_s14, %s1407_s10  ;;  %s1412_s17 = sshll.u32 %s1556_s13, 4  ;;  %s1413_s17 = int_to_ptr.vmem [resolvable:$false] %s1412_s17 }
  0x27   : > { %s1414_s23 = scalar_lea.vmem %s1413_s17, 192  ;;  %p1415_p11 = scmp.lt.s32.totalorder %s1674_s14, %s1413_s17 }
  0x28   : > { %p1410_p4 = pnand %p1408_p2, %p1394_p3  ;;  %p1416_p7 = scmp.lt.s32.totalorder %s1414_s23, %s1407_s10 }
  0x2a   : > { %p1411_p12 = pneg %p1410_p4  ;;  %p1417_p8 = por %p1416_p7, %p1415_p11 }
  0x2c   : > { %p1418_p9 = pnand %p1417_p8, %p1411_p12 }
  0x2e   : > { %1421 = shalt.err (!%p1418_p9)
}
  0x2f   : > { %1297 = dma.hbm_to_vmem [thread:$0]  (!%p1667_p13), %s1665_s11, 96, %s1674_s14, %s199_s15  }
  0x30   : > { %p2021_p0 = scmp.lt.s32.totalorder %s1554_s21, 3  ;;  %p2022_p1 = scmp.ge.s32.totalorder %s1554_s21, 1 }
  0x31   : > { %s1716_s9 = scalar_lea.hbm %s2010_s1, %s1279_s7  ;;  %s221_s10 = scalar_lea.vmem [#allocation6], %s1278_s8 }
  0x32   : > { %p1707_p5 = pnand %p2022_p1, %p2021_p0  ;;  %s229_s13 = sshll.u32 %s221_s10, 4  ;;  %s230_s13 = int_to_ptr.vmem [resolvable:$true] %s229_s13 }
  0x33   : > { %s218_s11 = scalar_lea.sflag [#allocation7], %s1656_s6  ;;  %s1422_s14 = scalar_lea.hbm %s1716_s9, 96 }
  0x34   : > { %s2023_s16 = scalar_select %p1707_p5, 1, 0 }
  0x35   : > { %p1423_p11 = scmp.ne.s32.totalorder %s1716_s9, %s1422_s14  ;;  %s1427_s7 = scalar_lea.hbm %s2010_s1, 192 }
  0x36   : > { %p1428_p2 = scmp.lt.u32.totalorder %s1716_s9, %s2010_s1  ;;  %p1429_p4 = scmp.lt.u32.totalorder %s1427_s7, %s1422_s14 }
  0x37   : > { %p1425_p12 = pnand %p1423_p11, %p1394_p3  ;;  %p1431_p8 = scmp.lt.u32.totalorder %s1422_s14, %s1716_s9 }
  0x38   : > { %p1430_p7 = por %p1429_p4, %p1428_p2 }
  0x39   : > { %p1426_p10 = pneg %p1425_p12 }
  0x3a   : > { %p1432_p9 = por %p1431_p8, %p1430_p7 }
  0x3c   : > { %p1433_p0 = pnand %p1432_p9, %p1426_p10 }
  0x3e   : > { %1436 = shalt.err (!%p1433_p0)
}
  0x3f   : > { %s1437_s6 = scalar_lea.vmem %s230_s13, 96  ;;  %s1557_s8 = smov [#allocation6]  }
  0x40   : > { %p1438_p1 = scmp.ne.s32.totalorder %s230_s13, %s1437_s6  ;;  %s1442_s26 = sshll.u32 %s1557_s8, 4  ;;  %s1443_s26 = int_to_ptr.vmem [resolvable:$false] %s1442_s26 }
  0x41   : > { %s1444_s10 = scalar_lea.vmem %s1443_s26, 192  ;;  %p1445_p6 = scmp.lt.s32.totalorder %s230_s13, %s1443_s26 }
  0x42   : > { %p1440_p11 = pnand %p1438_p1, %p1394_p3  ;;  %p1446_p5 = scmp.lt.s32.totalorder %s1444_s10, %s1437_s6 }
  0x44   : > { %p1441_p12 = pneg %p1440_p11  ;;  %p1447_p2 = por %p1446_p5, %p1445_p6 }
  0x46   : > { %p1448_p4 = pnand %p1447_p2, %p1441_p12 }
  0x48   : > { %1451 = shalt.err (!%p1448_p4)
}
  0x49   : > { %1300 = dma.hbm_to_vmem [thread:$0]  (!%p1667_p13), %s1716_s9, 96, %s230_s13, %s218_s11  }
  0x4a   : > { %p2024_p10 = scmp.ne.s32.totalorder %s2023_s16, 0 }
  0x4b   : > { %s1743_s14 = sand.u32 (!%p2024_p10), 1, %s1546_s19   ;;  %p2025_p6 = scmp.ne.s32.totalorder (!%p2024_p10), %s2017_s28, 0 }
  0x4c   : > { %238 = sbr.rel (%p2024_p10) target bundleno = 556 (0x22c), region = 36  ;;  %s241_s17 = scalar_lea.sflag (!%p2024_p10), [#allocation4], %s1743_s14 }
  0x4d   : > { %s1282_s15 = smul.u32 (!%p2024_p10), 6, %s1743_s14 }
  0x4f   : > { %s1747_s7 = scalar_lea.vmem (!%p2024_p10), [#allocation3], %s1282_s15 }
  0x53   : > { %1525 = dma.done.wait (%p2025_p6), %s241_s17, 96  }
  0x54   : > { %1527 = vsyncadd (%p2025_p6), %s241_s17, 4294967200  ;;  %s250_s12 = scalar_lea.sflag [#allocation7], %s1743_s14  ;;  %s1754_s16 = scalar_lea.vmem [#allocation6], %s1282_s15 }
  0x55   : > { %1529 = dma.done.wait (%p2025_p6), %s250_s12, 96  }
  0x56   : > { %1531 = vsyncadd (%p2025_p6), %s250_s12, 4294967200  ;;  %s1283_s9 = smul.u32 12, %s1743_s14  ;;  %p1247_p13 = scmp.ne.s32.totalorder %s1622_s22, 0 }
  0x57   : > { %v1558_v0 = vmov (!%p1247_p13), 0  }
  0x58   : > { %s1761_s13 = scalar_lea.vmem [#allocation8], %s1283_s9  ;;  %s1763_s11 = scalar_lea.vmem [#allocation9], %s1283_s9  ;;  %295 = vst [vmem:[#allocation2] sm:$0xff] (!%p1247_p13), %v1558_v0  ;;  %296 = vst [vmem:[#allocation2 + $0x8] sm:$0xff] (!%p1247_p13), %v1558_v0 }
  0x59   : > { %294 = sbr.rel (%p1247_p13) target bundleno = 96 (0x60), region = 48  ;;  %297 = vst [vmem:[#allocation2 + $0x10] sm:$0xff] (!%p1247_p13), %v1558_v0  ;;  %298 = vst [vmem:[#allocation2 + $0x18] sm:$0xff] (!%p1247_p13), %v1558_v0 }
  0x5a   : > { %299 = vst [vmem:[#allocation2 + $0x20] sm:$0xff] (!%p1247_p13), %v1558_v0  ;;  %300 = vst [vmem:[#allocation2 + $0x28] sm:$0xff] (!%p1247_p13), %v1558_v0 }
  0x5b   : > { %301 = vst [vmem:[#allocation2 + $0x30] sm:$0xff] (!%p1247_p13), %v1558_v0  ;;  %302 = vst [vmem:[#allocation2 + $0x38] sm:$0xff] (!%p1247_p13), %v1558_v0 }
  0x5c   : > { %303 = vst [vmem:[#allocation2 + $0x40] sm:$0xff] (!%p1247_p13), %v1558_v0  ;;  %304 = vst [vmem:[#allocation2 + $0x48] sm:$0xff] (!%p1247_p13), %v1558_v0 }
  0x5d   : > { %305 = vst [vmem:[#allocation2 + $0x50] sm:$0xff] (!%p1247_p13), %v1558_v0  ;;  %306 = vst [vmem:[#allocation2 + $0x58] sm:$0xff] (!%p1247_p13), %v1558_v0 }
  0x5e   : > { %307 = vst [vmem:[#allocation2 + $0x60] sm:$0x33] (!%p1247_p13), %v1558_v0  ;;  %308 = vst [vmem:[#allocation2 + $0x68] sm:$0x33] (!%p1247_p13), %v1558_v0 }
  0x5f   : > { %309 = vst [vmem:[#allocation2 + $0x70] sm:$0x33] (!%p1247_p13), %v1558_v0 }
  0x60 PF: > { %v325_v1 = vlaneseq  ;;  %v1559_v2 = vmov 1983009808   ;;  %v355_v4 = vld [vmem:[%s1747_s7] sm:$0x3f]  ;;  %s1560_s28 = smov 126   ;;  %s1561_s23 = smov 127  }
  0x61   : > { %v323_v3 = vunpack.c.l.s4 %v1559_v2  ;;  %v357_v7 = vcombine.low %v355_v4, %v355_v4  ;;  %v416_v8 = vld [vmem:[%s1747_s7] sm:$0x3f]  ;;  %s1562_s25 = smov 110   ;;  %s1563_s6 = smov 109   ;;  %v334_v36 = vld [vmem:[%s1754_s16] sm:$0x3f] }
  0x62   : > { %v326_v5 = vshrl.u32 %v325_v1, 7  ;;  %v418_v10 = vcombine.high %v416_v8, %v416_v8  ;;  %v475_v11 = vld [vmem:[%s1747_s7] sm:$0x3f]  ;;  %s1564_s8 = smov 108   ;;  %v336_v37 = vcombine.high %v334_v36, %v334_v36  ;;  %s1565_s26 = smov 92   ;;  %vm332_vm0 = vcmask 254976  }
  0x63   : > { %v324_v6 = vunpack.c.0.s8 %v323_v3  ;;  %v312_v14 = vld [vmem:[%s1747_s7] sm:$0x3f]  ;;  %v477_v17 = vcombine.low %v475_v11, %v475_v11  ;;  %1249 = vst.sshfl [vmem:[#allocation2 + $0xc] sm:$0xf pattern:$0x76325410] %v334_v36 }
  0x64   : > { %1248 = vst.sshfl [vmem:[#allocation2] sm:$0xf pattern:$0x76325410] %v312_v14  ;;  %v534_v18 = vld [vmem:[%s1747_s7] sm:$0x3f]  ;;  %v314_v35 = vcombine.high %v312_v14, %v312_v14 }
  0x65   : > { %v1768_v9 = vsub.s32 %v324_v6, %v326_v5  ;;  %v536_v21 = vcombine.high %v534_v18, %v534_v18  ;;  %v593_v22 = vld [vmem:[%s1747_s7] sm:$0x3f]  ;;  %v387_v41 = vld [vmem:[%s1754_s16] sm:$0x3f]  ;;  %s1566_s10 = smov 91   ;;  %s1567_s15 = smov 90  }
  0x66   : > { %v595_v25 = vcombine.low %v593_v22, %v593_v22  ;;  %v652_v26 = vld [vmem:[%s1747_s7] sm:$0x3f]  ;;  %v389_v46 = vcombine.low %v387_v41, %v387_v41  ;;  %v446_v47 = vld [vmem:[%s1754_s16] sm:$0x3f]  ;;  %v1568_v0 = vmov 0   ;;  %vm385_vm1 = vcmask 257026  }
  0x67   : > { %v425_v12 = vrot.slane %v416_v8, %v1768_v9  ;;  %v364_v13 = vrot.slane %v357_v7, %v1768_v9  ;;  %v432_v15 = vrot.slane %v418_v10, %v1768_v9  ;;  %v371_v16 = vrot.slane %v355_v4, %v1768_v9  ;;  %v711_v30 = vld [vmem:[%s1747_s7] sm:$0x3f]  ;;  %v505_v51 = vld [vmem:[%s1754_s16] sm:$0x3f]  ;;  %979 = vmatprep.mubr.bf16.mxu0 %v1568_v0  ;;  %s1284_s9 = smul.u32 192, %s1622_s22  ;;  %p2026_p5 = scmp.ne.s32.totalorder %s2018_s29, 0 }
  0x68   : > { %v491_v19 = vrot.slane %v475_v11, %v1768_v9  ;;  %v484_v20 = vrot.slane %v477_v17, %v1768_v9  ;;  %v550_v23 = vrot.slane %v536_v21, %v1768_v9  ;;  %v543_v24 = vrot.slane %v534_v18, %v1768_v9  ;;  %v770_v34 = vld [vmem:[%s1747_s7] sm:$0x3f]  ;;  %v564_v55 = vld [vmem:[%s1754_s16] sm:$0x3f]  ;;  %1020 = vmatprep.mubr.bf16.mxu1 %v1568_v0  ;;  %s1569_s7 = smov [#allocation8]  }
  0x69   : > { %433 = vrot.lane.b32.xlu1 %v425_v12, %s1560_s28  ;;  %372 = vrot.lane.b32.xlu0 %v364_v13, %s1561_s23  ;;  %v609_v27 = vrot.slane %v593_v22, %v1768_v9  ;;  %v602_v28 = vrot.slane %v595_v25, %v1768_v9  ;;  %v654_v29 = vcombine.high %v652_v26, %v652_v26  ;;  %v623_v59 = vld [vmem:[%s1754_s16] sm:$0x3f]  ;;  %vm378_vm2 = vcmask 1043456  }
  0x6a   : > { %v661_v32 = vrot.slane %v652_v26, %v1768_v9  ;;  %v713_v33 = vcombine.low %v711_v30, %v711_v30  ;;  %v727_v38 = vrot.slane %v711_v30, %v1768_v9  ;;  %v772_v40 = vcombine.high %v770_v34, %v770_v34  ;;  %v682_v63 = vld [vmem:[%s1754_s16] sm:$0x3f]  ;;  %1353 = vset.pattern.permute.xlu0 %v1568_v0 }
  0x6b   : > { %v668_v31 = vrot.slane %v654_v29, %v1768_v9  ;;  %v328_v42 = vrot.slane %v314_v35, %v1768_v9  ;;  %v350_v43 = vrot.slane %v336_v37, %v1768_v9  ;;  %v779_v45 = vrot.slane %v770_v34, %v1768_v9  ;;  %v741_v4 = vld [vmem:[%s1754_s16] sm:$0x3f] }
  0x6c   : > { %v720_v39 = vrot.slane %v713_v33, %v1768_v9  ;;  %v786_v44 = vrot.slane %v772_v40, %v1768_v9  ;;  %v403_v48 = vrot.slane %v387_v41, %v1768_v9  ;;  %v396_v49 = vrot.slane %v389_v46, %v1768_v9  ;;  %v800_v8 = vld [vmem:[%s1754_s16] sm:$0x3f] }
  0x6d   : > { %435 = vrot.lane.b32.xlu1 %v432_v15, %s1560_s28  ;;  %374 = vrot.lane.b32.xlu0 %v371_v16, %s1561_s23  ;;  %333 = vst.msk [vmem:[#allocation2 + $0x8] sm:$0x3] %vm332_vm0, %v328_v42  ;;  %354 = vst.msk [vmem:[#allocation2 + $0x14] sm:$0x3] %vm332_vm0, %v350_v43  ;;  %v448_v50 = vcombine.high %v446_v47, %v446_v47  ;;  %v455_v53 = vrot.slane %v446_v47, %v1768_v9  ;;  %v311_v15 = vld [vmem:[%s2012_s3] sm:$0xf] }
  0x6e   : > { %v507_v54 = vcombine.low %v505_v51, %v505_v51  ;;  %v521_v56 = vrot.slane %v505_v51, %v1768_v9  ;;  %v566_v58 = vcombine.high %v564_v55, %v564_v55  ;;  %v573_v61 = vrot.slane %v564_v55, %v1768_v9 }
  0x6f   : > { %v462_v52 = vrot.slane %v448_v50, %v1768_v9  ;;  %v625_v62 = vcombine.low %v623_v59, %v623_v59  ;;  %v639_v1 = vrot.slane %v623_v59, %v1768_v9  ;;  %v684_v3 = vcombine.high %v682_v63, %v682_v63 }
  0x70   : > { %v514_v57 = vrot.slane %v507_v54, %v1768_v9  ;;  %v580_v60 = vrot.slane %v566_v58, %v1768_v9  ;;  %v691_v6 = vrot.slane %v682_v63, %v1768_v9  ;;  %v743_v7 = vcombine.low %v741_v4, %v741_v4 }
  0x71   : > { %494 = vrot.lane.b32.xlu1 %v491_v19, %s1562_s25  ;;  %492 = vrot.lane.b32.xlu0 %v484_v20, %s1562_s25  ;;  %v632_v2 = vrot.slane %v625_v62, %v1768_v9  ;;  %v698_v5 = vrot.slane %v684_v3, %v1768_v9  ;;  %v757_v10 = vrot.slane %v741_v4, %v1768_v9  ;;  %vm440_vm3 = vcmask 1031168  }
  0x72   : > { %v750_v11 = vrot.slane %v743_v7, %v1768_v9  ;;  %v802_v12 = vcombine.high %v800_v8, %v800_v8  ;;  %v809_v14 = vrot.slane %v800_v8, %v1768_v9  ;;  %vm380_vm4 = vcmask 1039360  }
  0x73   : > { %vm499_vm5 = vcmask 900096   ;;  %vm558_vm6 = vcmask 891904   ;;  %vm617_vm7 = vcmask 883712   ;;  %vm676_vm8 = vcmask 752640  }
  0x74   : > { %v816_v13 = vrot.slane %v802_v12, %v1768_v9  ;;  %vm735_vm9 = vcmask 744448   ;;  %vm794_vm10 = vcmask 736256   ;;  %vm928_vm11 = vcmask 1041408  }
  0x75   : > { %553 = vrot.lane.b32.xlu1 %v550_v23, %s1563_s6  ;;  %551 = vrot.lane.b32.xlu0 %v543_v24, %s1563_s6  ;;  %vm924_vm12 = vcmask 293888  }
  0x79   : > { %612 = vrot.lane.b32.xlu1 %v609_v27, %s1564_s8  ;;  %610 = vrot.lane.b32.xlu0 %v602_v28, %s1564_s8 }
  0x7d   : > { %671 = vrot.lane.b32.xlu1 %v668_v31, %s1565_s26  ;;  %669 = vrot.lane.b32.xlu0 %v661_v32, %s1565_s26 }
  0x81   : > { %730 = vrot.lane.b32.xlu1 %v727_v38, %s1566_s10  ;;  %728 = vrot.lane.b32.xlu0 %v720_v39, %s1566_s10 }
  0x85   : > { %789 = vrot.lane.b32.xlu1 %v786_v44, %s1567_s15  ;;  %787 = vrot.lane.b32.xlu0 %v779_v45, %s1567_s15 }
  0x89   : > { %406 = vrot.lane.b32.xlu1 %v403_v48, %s1561_s23  ;;  %404 = vrot.lane.b32.xlu0 %v396_v49, %s1561_s23  ;;  %s1116_s23 = sshll.u32 %s1763_s11, 4  ;;  %s1943_s23 = int_to_ptr.vmem [resolvable:$true] %s1116_s23 }
  0x8d   : > { %465 = vrot.lane.b32.xlu1 %v462_v52, %s1560_s28  ;;  %463 = vrot.lane.b32.xlu0 %v455_v53, %s1560_s28  ;;  %s1102_s28 = sshll.u32 %s1761_s13, 4  ;;  %s1935_s28 = int_to_ptr.vmem [resolvable:$true] %s1102_s28 }
  0x8e   : > { %s1452_s17 = scalar_lea.vmem %s1935_s28, 192 }
  0x8f   : > { %p1453_p3 = scmp.ne.s32.totalorder %s1935_s28, %s1452_s17 }
  0x91   : > { %524 = vrot.lane.b32.xlu1 %v521_v56, %s1562_s25  ;;  %522 = vrot.lane.b32.xlu0 %v514_v57, %s1562_s25  ;;  %p1454_p7 = pnand %p1453_p3, %p2026_p5 }
  0x93   : > { %p1455_p8 = pneg %p1454_p7 }
  0x95   : > { %583 = vrot.lane.b32.xlu1 %v580_v60, %s1563_s6  ;;  %581 = vrot.lane.b32.xlu0 %v573_v61, %s1563_s6 }
  0x99   : > { %642 = vrot.lane.b32.xlu1 %v639_v1, %s1564_s8  ;;  %640 = vrot.lane.b32.xlu0 %v632_v2, %s1564_s8  ;;  %s1933_s8 = scalar_lea.hbm %s2013_s4, %s1284_s9 }
  0x9d   : > { %701 = vrot.lane.b32.xlu1 %v698_v5, %s1565_s26  ;;  %699 = vrot.lane.b32.xlu0 %v691_v6, %s1565_s26 }
  0xa1   : > { %760 = vrot.lane.b32.xlu1 %v757_v10, %s1566_s10  ;;  %758 = vrot.lane.b32.xlu0 %v750_v11, %s1566_s10  ;;  %s1941_s10 = scalar_lea.hbm %s2014_s5, %s1284_s9 }
  0xa5   : > { %819 = vrot.lane.b32.xlu1 %v816_v13, %s1567_s15  ;;  %817 = vrot.lane.b32.xlu0 %v809_v14, %s1567_s15  ;;  %s1083_s15 = scalar_lea.sflag [#allocation5], %s1743_s14 }
  0xa9   : > { %846 = vperm.xlu0 %1353, %v311_v15  }
  0xdb   : > { %v434_v16 = vpop.permute.xlu1 %433  ;;  %v373_v17 = vpop.permute.xlu0 %372 }
  0xdc   : > { %v437_v20 = vrot.slane %v434_v16, 4  ;;  %v376_v21 = vrot.slane %v373_v17, 4 }
  0xdf   : > { %v436_v18 = vpop.permute.xlu1 %435  ;;  %v375_v19 = vpop.permute.xlu0 %374 }
  0xe0   : > { %v438_v9 = vrot.slane %v436_v18, 4  ;;  %445 = vst.msk [vmem:[#allocation2 + $0x20] sm:$0x3] %vm332_vm0, %v436_v18  ;;  %v377_v22 = vrot.slane %v375_v19, 4 }
  0xe1   : > { %386 = vst.msk [vmem:[#allocation2 + $0x8] sm:$0xc] %vm385_vm1, %v375_v19 }
  0xe2   : > { %v439_v23 = vsel %vm378_vm2, %v437_v20, %v438_v9  ;;  %v379_v24 = vsel %vm378_vm2, %v376_v21, %v377_v22 }
  0xe3   : > { %v441_v25 = vsel %vm440_vm3, %v434_v16, %v439_v23  ;;  %v381_v26 = vsel %vm380_vm4, %v373_v17, %v379_v24  ;;  %v495_v27 = vpop.permute.xlu1 %494  ;;  %v493_v28 = vpop.permute.xlu0 %492 }
  0xe4   : > { %444 = vst [vmem:[#allocation2 + $0x18] sm:$0x33] %v441_v25  ;;  %384 = vst [vmem:[#allocation2] sm:$0xcc] %v381_v26  ;;  %v497_v29 = vrot.slane %v495_v27, 4  ;;  %v496_v30 = vrot.slane %v493_v28, 4 }
  0xe5   : > { %504 = vst.msk [vmem:[#allocation2 + $0x20] sm:$0xc] %vm385_vm1, %v495_v27 }
  0xe6   : > { %v498_v31 = vsel %vm378_vm2, %v496_v30, %v497_v29 }
  0xe7   : > { %v500_v32 = vsel %vm499_vm5, %v493_v28, %v498_v31  ;;  %v554_v33 = vpop.permute.xlu1 %553  ;;  %v552_v34 = vpop.permute.xlu0 %551 }
  0xe8   : > { %503 = vst [vmem:[#allocation2 + $0x18] sm:$0xcc] %v500_v32  ;;  %v556_v35 = vrot.slane %v554_v33, 4  ;;  %563 = vst.msk [vmem:[#allocation2 + $0x38] sm:$0x3] %vm332_vm0, %v554_v33  ;;  %v555_v36 = vrot.slane %v552_v34, 4 }
  0xe9   : > { %v1898_v32 = vld [vmem:[%s2011_s2] sm:$0x3] }
  0xea   : > { %v557_v37 = vsel %vm378_vm2, %v555_v36, %v556_v35 }
  0xeb   : > { %v559_v38 = vsel %vm558_vm6, %v552_v34, %v557_v37  ;;  %v613_v39 = vpop.permute.xlu1 %612  ;;  %v611_v40 = vpop.permute.xlu0 %610  ;;  %v829_v47 = vld [vmem:[#allocation2] sm:$0xff] }
  0xec   : > { %562 = vst [vmem:[#allocation2 + $0x30] sm:$0x33] %v559_v38  ;;  %v615_v41 = vrot.slane %v613_v39, 4  ;;  %622 = vst.msk [vmem:[#allocation2 + $0x38] sm:$0xc] %vm385_vm1, %v613_v39  ;;  %v614_v42 = vrot.slane %v611_v40, 4 }
  0xee   : > { %v616_v43 = vsel %vm378_vm2, %v614_v42, %v615_v41 }
  0xef   : > { %v618_v44 = vsel %vm617_vm7, %v611_v40, %v616_v43  ;;  %v672_v45 = vpop.permute.xlu1 %671  ;;  %v670_v46 = vpop.permute.xlu0 %669  ;;  %v832_v48 = vld [vmem:[#allocation2 + $0x18] sm:$0xff] }
  0xf0   : > { %v1371_v49 = vld [vmem:[#allocation2 + $0x4] ss:$24 sps:$4 sm:$0xff]   ;;  %621 = vst [vmem:[#allocation2 + $0x30] sm:$0xcc] %v618_v44  ;;  %v674_v50 = vrot.slane %v672_v45, 4  ;;  %v673_v51 = vrot.slane %v670_v46, 4  ;;  %v1250_v52 = vcombine.low %v829_v47, %v832_v48 }
  0xf1   : > { %681 = vst.msk [vmem:[#allocation2 + $0x50] sm:$0x3] %vm332_vm0, %v672_v45  ;;  %947 = vmatprep.subr.bf16.mxu0 %v1371_v49 }
  0xf2   : > { %v675_v53 = vsel %vm378_vm2, %v673_v51, %v674_v50  ;;  %948 = vmatpush1.bf16.msra.mxu0 %v1250_v52 }
  0xf3   : > { %v677_v54 = vsel %vm676_vm8, %v670_v46, %v675_v53  ;;  %v731_v55 = vpop.permute.xlu1 %730  ;;  %v729_v56 = vpop.permute.xlu0 %728 }
  0xf4   : > { %680 = vst [vmem:[#allocation2 + $0x48] sm:$0x33] %v677_v54  ;;  %v733_v57 = vrot.slane %v731_v55, 4  ;;  %740 = vst.msk [vmem:[#allocation2 + $0x50] sm:$0xc] %vm385_vm1, %v731_v55  ;;  %v732_v58 = vrot.slane %v729_v56, 4 }
  0xf6   : > { %v734_v59 = vsel %vm378_vm2, %v732_v58, %v733_v57 }
  0xf7   : > { %v736_v60 = vsel %vm735_vm9, %v729_v56, %v734_v59  ;;  %v790_v61 = vpop.permute.xlu1 %789  ;;  %v788_v62 = vpop.permute.xlu0 %787  ;;  %v835_v13 = vld [vmem:[#allocation2 + $0x30] sm:$0xff] }
  0xf8   : > { %739 = vst [vmem:[#allocation2 + $0x48] sm:$0xcc] %v736_v60  ;;  %v792_v63 = vrot.slane %v790_v61, 4  ;;  %799 = vst.msk [vmem:[#allocation2 + $0x68] sm:$0x3] %vm332_vm0, %v790_v61  ;;  %v791_v1 = vrot.slane %v788_v62, 4 }
  0xfa   : > { %v793_v2 = vsel %vm378_vm2, %v791_v1, %v792_v63 }
  0xfb   : > { %v795_v3 = vsel %vm794_vm10, %v788_v62, %v793_v2  ;;  %v407_v4 = vpop.permute.xlu1 %406  ;;  %v405_v5 = vpop.permute.xlu0 %404 }
  0xfc   : > { %798 = vst [vmem:[#allocation2 + $0x60] sm:$0x33] %v795_v3  ;;  %v409_v6 = vrot.slane %v407_v4, 4  ;;  %415 = vst.msk [vmem:[#allocation2 + $0x14] sm:$0xc] %vm385_vm1, %v407_v4  ;;  %v408_v7 = vrot.slane %v405_v5, 4 }
  0xfe   : > { %v410_v8 = vsel %vm378_vm2, %v408_v7, %v409_v6  ;;  %v1387_v6 = vld [vmem:[#allocation2 + $0x38] ss:$24 sps:$4 sm:$0xff]  }
  0xff   : > { %v411_v10 = vsel %vm380_vm4, %v405_v5, %v410_v8  ;;  %v466_v11 = vpop.permute.xlu1 %465  ;;  %v464_v12 = vpop.permute.xlu0 %463  ;;  %v838_v14 = vld [vmem:[#allocation2 + $0x48] sm:$0xff] }
 0x100   : > { %v1373_v15 = vld [vmem:[#allocation2 + $0x34] ss:$24 sps:$4 sm:$0xff]   ;;  %414 = vst [vmem:[#allocation2 + $0xc] sm:$0xcc] %v411_v10  ;;  %v468_v16 = vrot.slane %v466_v11, 4  ;;  %v467_v17 = vrot.slane %v464_v12, 4  ;;  %v1256_v18 = vcombine.low %v835_v13, %v838_v14 }
 0x101   : > { %474 = vst.msk [vmem:[#allocation2 + $0x2c] sm:$0x3] %vm332_vm0, %v466_v11  ;;  %949 = vmatprep.subr.bf16.mxu0 %v1373_v15 }
 0x102   : > { %v469_v19 = vsel %vm378_vm2, %v467_v17, %v468_v16  ;;  %950 = vmatpush1.bf16.msra.mxu0 %v1256_v18 }
 0x103   : > { %v470_v20 = vsel %vm440_vm3, %v464_v12, %v469_v19  ;;  %v525_v21 = vpop.permute.xlu1 %524  ;;  %v523_v9 = vpop.permute.xlu0 %522  ;;  %v841_v22 = vld [vmem:[#allocation2 + $0x60] sm:$0x33] }
 0x104   : > { %473 = vst [vmem:[#allocation2 + $0x24] sm:$0x33] %v470_v20  ;;  %v527_v23 = vrot.slane %v525_v21, 4  ;;  %533 = vst.msk [vmem:[#allocation2 + $0x2c] sm:$0xc] %vm385_vm1, %v525_v21  ;;  %v526_v24 = vrot.slane %v523_v9, 4  ;;  %v1263_v25 = vcombine.high %v841_v22, %v841_v22  ;;  %v1262_v26 = vcombine.low %v841_v22, %v841_v22 }
 0x106   : > { %v528_v27 = vsel %vm378_vm2, %v526_v24, %v527_v23  ;;  %1268 = vmatprep.subr.msk.bf16.mxu0 %vm928_vm11, %v1263_v25  ;;  %v930_v28 = vsel %vm928_vm11, %v1262_v26, 0 }
 0x107   : > { %v529_v29 = vsel %vm499_vm5, %v523_v9, %v528_v27  ;;  %v584_v30 = vpop.permute.xlu1 %583  ;;  %v582_v31 = vpop.permute.xlu0 %581  ;;  %952 = vmatpush1.bf16.msra.mxu0 %v930_v28  ;;  %v830_v42 = vld [vmem:[#allocation2 + $0x8] sm:$0xff] }
 0x108   : > { %532 = vst [vmem:[#allocation2 + $0x24] sm:$0xcc] %v529_v29  ;;  %v586_v33 = vrot.slane %v584_v30, 4  ;;  %592 = vst.msk [vmem:[#allocation2 + $0x44] sm:$0x3] %vm332_vm0, %v584_v30  ;;  %v585_v34 = vrot.slane %v582_v31, 4 }
 0x10a   : > { %v587_v35 = vsel %vm378_vm2, %v585_v34, %v586_v33  ;;  %1269 = vmatmul.mubr.msk.bf16.vlgmr.msra.gmra.mrb[0].mxu0 %vm924_vm12, %v1898_v32 }
 0x10b   : > { %v588_v36 = vsel %vm558_vm6, %v582_v31, %v587_v35  ;;  %v643_v37 = vpop.permute.xlu1 %642  ;;  %v641_v38 = vpop.permute.xlu0 %640  ;;  %1061 = vmatprep.mubr.bf16.mxu0 %v1568_v0  ;;  %v1381_v50 = vld [vmem:[#allocation2 + $0x14] ss:$24 sps:$4 sm:$0xff]  }
 0x10c   : > { %591 = vst [vmem:[#allocation2 + $0x3c] sm:$0x33] %v588_v36  ;;  %v645_v39 = vrot.slane %v643_v37, 4  ;;  %651 = vst.msk [vmem:[#allocation2 + $0x44] sm:$0xc] %vm385_vm1, %v643_v37  ;;  %v644_v40 = vrot.slane %v641_v38, 4  ;;  %1029 = vmatprep.subr.bf16.mxu0 %v1381_v50 }
 0x10e   : > { %v646_v41 = vsel %vm378_vm2, %v644_v40, %v645_v39 }
 0x10f   : > { %v647_v43 = vsel %vm617_vm7, %v641_v38, %v646_v41  ;;  %v702_v44 = vpop.permute.xlu1 %701  ;;  %v700_v45 = vpop.permute.xlu0 %699  ;;  %v833_v46 = vld [vmem:[#allocation2 + $0x20] sm:$0xff]  ;;  %v1379_v0 = vld [vmem:[#allocation2 + $0x10] ss:$24 sps:$4 sm:$0xff]  }
 0x110   : > { %v1377_v47 = vld [vmem:[#allocation2 + $0xc] ss:$24 sps:$4 sm:$0xff]   ;;  %650 = vst [vmem:[#allocation2 + $0x3c] sm:$0xcc] %v647_v43  ;;  %v704_v48 = vrot.slane %v702_v44, 4  ;;  %v703_v49 = vrot.slane %v700_v45, 4  ;;  %v1252_v51 = vcombine.low %v830_v42, %v833_v46  ;;  %1030 = vmatpush1.bf16.msra.mxu0 %v1379_v0 }
 0x111   : > { %710 = vst.msk [vmem:[#allocation2 + $0x5c] sm:$0x3] %vm332_vm0, %v702_v44  ;;  %988 = vmatprep.subr.bf16.mxu1 %v1377_v47 }
 0x112   : > { %v705_v52 = vsel %vm378_vm2, %v703_v49, %v704_v48  ;;  %989 = vmatpush1.bf16.msra.mxu1 %v1252_v51 }
 0x113   : > { %v706_v53 = vsel %vm676_vm8, %v700_v45, %v705_v52  ;;  %v761_v54 = vpop.permute.xlu1 %760  ;;  %v759_v55 = vpop.permute.xlu0 %758 }
 0x114   : > { %709 = vst [vmem:[#allocation2 + $0x54] sm:$0x33] %v706_v53  ;;  %v763_v56 = vrot.slane %v761_v54, 4  ;;  %769 = vst.msk [vmem:[#allocation2 + $0x5c] sm:$0xc] %vm385_vm1, %v761_v54  ;;  %v762_v57 = vrot.slane %v759_v55, 4 }
 0x116   : > { %v764_v58 = vsel %vm378_vm2, %v762_v57, %v763_v56 }
 0x117   : > { %v765_v59 = vsel %vm735_vm9, %v759_v55, %v764_v58  ;;  %v820_v60 = vpop.permute.xlu1 %819  ;;  %v818_v61 = vpop.permute.xlu0 %817 }
 0x118   : > { %768 = vst [vmem:[#allocation2 + $0x54] sm:$0xcc] %v765_v59  ;;  %v822_v62 = vrot.slane %v820_v60, 4  ;;  %828 = vst.msk [vmem:[#allocation2 + $0x74] sm:$0x3] %vm332_vm0, %v820_v60  ;;  %v821_v63 = vrot.slane %v818_v61, 4 }
 0x11a   : > { %v823_v1 = vsel %vm378_vm2, %v821_v63, %v822_v62 }
 0x11b   : > { %v824_v2 = vsel %vm794_vm10, %v818_v61, %v823_v1  ;;  %v1386_v5 = vld [vmem:[#allocation2 + $0x44] ss:$24 sps:$4 sm:$0xff]  }
 0x11c   : > { %827 = vst [vmem:[#allocation2 + $0x6c] sm:$0x33] %v824_v2  ;;  %1031 = vmatprep.subr.bf16.mxu0 %v1386_v5 }
 0x11f   : > { %v1382_v3 = vld [vmem:[#allocation2 + $0x3c] ss:$24 sps:$4 sm:$0xff]   ;;  %v1384_v4 = vld [vmem:[#allocation2 + $0x40] ss:$24 sps:$4 sm:$0xff]  }
 0x120   : > { %990 = vmatprep.subr.bf16.mxu1 %v1382_v3  ;;  %1032 = vmatpush1.bf16.msra.mxu0 %v1384_v4 }
 0x121   : > { %991 = vmatpush1.bf16.msra.mxu1 %v1387_v6 }
 0x123   : > { %v842_v7 = vld [vmem:[#allocation2 + $0x68] sm:$0x33]  ;;  %v843_v8 = vld [vmem:[#allocation2 + $0x70] sm:$0x33] }
 0x124   : > { %v1265_v10 = vcombine.high %v842_v7, %v842_v7  ;;  %v1267_v11 = vcombine.high %v843_v8, %v843_v8  ;;  %v1264_v12 = vcombine.low %v842_v7, %v842_v7  ;;  %v1266_v13 = vcombine.low %v843_v8, %v843_v8 }
 0x126   : > { %1270 = vmatprep.subr.msk.bf16.mxu1 %vm928_vm11, %v1265_v10  ;;  %1272 = vmatprep.subr.msk.bf16.mxu0 %vm928_vm11, %v1267_v11  ;;  %v936_v14 = vsel %vm928_vm11, %v1264_v12, 0  ;;  %v942_v15 = vsel %vm928_vm11, %v1266_v13, 0 }
 0x127   : > { %993 = vmatpush1.bf16.msra.mxu1 %v936_v14  ;;  %1034 = vmatpush1.bf16.msra.mxu0 %v942_v15 }
 0x128   : > { %v847_v16 = vpop.permute.xlu0 %846 }
 0x12a   : > { %1271 = vmatmul.mubr.msk.bf16.vlgmr.msra.gmra.mrb[0].mxu1 %vm924_vm12, %v1898_v32  ;;  %1273 = vmatmul.mubr.msk.bf16.vlgmr.msra.gmra.mrb[4].mxu0 %vm924_vm12, %v1898_v32 }
 0x1dd   : > { %v981_v17 = vpop.f32.mrb[0].mxu0 }
 0x1de   : > { %v983_v18 = vpop.f32.mrb[1].mxu0  ;;  %v982_v19 = vadd.f32 %v981_v17, %v847_v16 }
 0x1df   : > { %v985_v20 = vpop.f32.mrb[2].mxu0  ;;  %v984_v21 = vadd.f32 %v983_v18, %v847_v16 }
 0x1e0   : > { %v986_v9 = vpop.f32.mrb[3].mxu0 }
 0x1e1   : > { %v1072_v22 = vcombine.low %v982_v19, %v984_v21 }
 0x1e3   : > { %1074 = vst [vmem:[%s1761_s13] sm:$0xff] %v1072_v22 }
 0x1fd   : > { %v1022_v23 = vpop.f32.mrb[0].mxu1  ;;  %v1063_v24 = vpop.f32.mrb[4].mxu0 }
 0x1fe   : > { %v1023_v25 = vadd.f32 %v1022_v23, %v847_v16  ;;  %v1064_v26 = vadd.f32 %v1063_v24, %v847_v16  ;;  %v1024_v27 = vpop.f32.mrb[1].mxu1  ;;  %v1065_v28 = vpop.f32.mrb[5].mxu0 }
 0x1ff   : > { %v1025_v29 = vadd.f32 %v1024_v27, %v847_v16  ;;  %v1066_v30 = vadd.f32 %v1065_v28, %v847_v16  ;;  %v1026_v31 = vpop.f32.mrb[2].mxu1  ;;  %v1067_v32 = vpop.f32.mrb[6].mxu0 }
 0x200   : > { %1075 = vst [vmem:[%s1761_s13 + $0x8] sm:$0xf] %v1023_v25  ;;  %v1027_v33 = vpop.f32.mrb[3].mxu1  ;;  %v1068_v34 = vpop.f32.mrb[7].mxu0  ;;  %s1456_s13 = sshll.u32 %s1569_s7, 4  ;;  %s1457_s13 = int_to_ptr.vmem [resolvable:$false] %s1456_s13 }
 0x201   : > { %v1078_v35 = vcombine.low %v1025_v29, %v1064_v26  ;;  %1081 = vst [vmem:[%s1763_s11 + $0x8] sm:$0xf] %v1066_v30  ;;  %s1458_s12 = scalar_lea.vmem %s1457_s13, 384  ;;  %p1459_p9 = scmp.lt.s32.totalorder %s1935_s28, %s1457_s13 }
 0x202   : > { %p1460_p0 = scmp.lt.s32.totalorder %s1458_s12, %s1452_s17 }
 0x204   : > { %p1461_p1 = por %p1460_p0, %p1459_p9 }
 0x206   : > { %p1462_p11 = pnand %p1461_p1, %p1455_p8 }
 0x208   : > { %1465 = shalt.err (!%p1462_p11)
}
 0x209   : > { %s1466_s16 = scalar_lea.hbm %s1933_s8, 192  ;;  %s1470_s6 = scalar_lea.hbm %s2013_s4, 384 }
 0x20a   : > { %p1467_p12 = scmp.ne.s32.totalorder %s1933_s8, %s1466_s16  ;;  %p1471_p10 = scmp.lt.u32.totalorder %s1933_s8, %s2013_s4 }
 0x20b   : > { %p1472_p6 = scmp.lt.u32.totalorder %s1470_s6, %s1466_s16  ;;  %p1474_p3 = scmp.lt.u32.totalorder %s1466_s16, %s1933_s8 }
 0x20c   : > { %p1468_p2 = pnand %p1467_p12, %p2026_p5 }
 0x20d   : > { %p1473_p13 = por %p1472_p6, %p1471_p10 }
 0x20e   : > { %p1469_p4 = pneg %p1468_p2 }
 0x20f   : > { %p1475_p7 = por %p1474_p3, %p1473_p13 }
 0x211   : > { %p1476_p8 = pnand %p1475_p7, %p1469_p4 }
 0x213   : > { %1479 = shalt.err (!%p1476_p8)
}
 0x214   : > { %1290 = dma.vmem_to_hbm [thread:$0]  (%p2026_p5), %s1935_s28, 192, %s1933_s8, %s1083_s15   ;;  %1080 = vst [vmem:[%s1763_s11] sm:$0xff] %v1078_v35 }
 0x215   : > { %s1088_s17 = scalar_lea.sflag [#allocation10], %s1743_s14  ;;  %s1480_s7 = scalar_lea.vmem %s1943_s23, 192 }
 0x216   : > { %p1481_p9 = scmp.ne.s32.totalorder %s1943_s23, %s1480_s7  ;;  %s1570_s13 = smov [#allocation9]  }
 0x217   : > { %s1484_s12 = sshll.u32 %s1570_s13, 4  ;;  %s1485_s12 = int_to_ptr.vmem [resolvable:$false] %s1484_s12 }
 0x218   : > { %p1482_p0 = pnand %p1481_p9, %p2026_p5  ;;  %s1486_s16 = scalar_lea.vmem %s1485_s12, 384 }
 0x219   : > { %p1487_p11 = scmp.lt.s32.totalorder %s1943_s23, %s1485_s12  ;;  %p1488_p12 = scmp.lt.s32.totalorder %s1486_s16, %s1480_s7 }
 0x21a   : > { %p1483_p1 = pneg %p1482_p0 }
 0x21b   : > { %p1489_p2 = por %p1488_p12, %p1487_p11 }
 0x21d   : > { %p1490_p4 = pnand %p1489_p2, %p1483_p1 }
 0x21f   : > { %1493 = shalt.err (!%p1490_p4)
}
 0x220   : > { %s1494_s14 = scalar_lea.hbm %s1941_s10, 192  ;;  %s1498_s8 = scalar_lea.hbm %s2014_s5, 384 }
 0x221   : > { %p1495_p10 = scmp.ne.s32.totalorder %s1941_s10, %s1494_s14  ;;  %p1499_p3 = scmp.lt.u32.totalorder %s1941_s10, %s2014_s5 }
 0x222   : > { %p1500_p7 = scmp.lt.u32.totalorder %s1498_s8, %s1494_s14  ;;  %p1502_p9 = scmp.lt.u32.totalorder %s1494_s14, %s1941_s10 }
 0x223   : > { %p1496_p6 = pnand %p1495_p10, %p2026_p5 }
 0x224   : > { %p1501_p8 = por %p1500_p7, %p1499_p3 }
 0x225   : > { %p1497_p13 = pneg %p1496_p6 }
 0x226   : > { %p1503_p0 = por %p1502_p9, %p1501_p8 }
 0x228   : > { %p1504_p1 = pnand %p1503_p0, %p1497_p13 }
 0x22a   : > { %1507 = shalt.err (!%p1504_p1)
}
 0x22b   : > { %1291 = dma.vmem_to_hbm [thread:$0]  (%p2026_p5), %s1943_s23, 192, %s1941_s10, %s1088_s17  }
 0x22c PF: > { %s1128_s25 = sand.u32 1, %s1542_s18   ;;  %p2027_p11 = scmp.ne.s32.totalorder %s2019_s30, 0 }
 0x22d   : > { %p2028_p12 = scmp.ge.s32.totalorder %s1554_s21, 2  ;;  %s1129_s6 = scalar_lea.sflag [#allocation5], %s1128_s25 }
 0x22f   : > { %p1302_p2 = pnand %p2028_p12, %p2027_p11 }
 0x231   : > { %1533 = dma.done.wait (!%p1302_p2), %s1129_s6, 192  }
 0x232   : > { %1535 = vsyncadd (!%p1302_p2), %s1129_s6, 4294967104  ;;  %s1138_s22 = scalar_lea.sflag [#allocation10], %s1128_s25 }
 0x233   : > { %1537 = dma.done.wait (!%p1302_p2), %s1138_s22, 192  }
 0x234   : > { %1539 = vsyncadd (!%p1302_p2), %s1138_s22, 4294967104  ;;  %p25_p5 = scmp.ge.s32.totalorder %s1626_s24, 4   ;;  %s2029_s18 = smov %s1546_s19 }
 0x235   : > { %s2030_s19 = smov %s1550_s20  ;;  %s2031_s20 = smov %s1638_s27 }
 0x236   : > { %s2032_s21 = smov %s1626_s24  ;;  %27 = sbr.rel (!%p25_p5) target bundleno = 9 (0x9), region = 115 }
 0x23d   :  { %1143 = vsyncpa [#allocation4], 1 }
 0x23e   :  { %1145 = vsyncpa [#allocation4 + $0x1], 1 }
 0x23f   :  { %1146 = vsyncpa [#allocation7], 1 }
 0x240   :  { %1148 = vsyncpa [#allocation7 + $0x1], 1 }
 0x241   :  { %1149 = vsyncpa [#allocation5], 1 }
 0x242   :  { %1151 = vsyncpa [#allocation5 + $0x1], 1 }
 0x243   :  { %1152 = vsyncpa [#allocation10], 1 }
 0x244   :  { %1154 = vsyncpa [#allocation10 + $0x1], 1 }

</bundles_post_ra>
